<compile_context>
chip_gen: v6e
topology: v6e:2x2x1
jax: 0.10.0
libtpu: 0.0.40
codegen_flags: <defaults>
</compile_context>

<pallas_src>
import functools

import jax
import jax.numpy as jnp
from jax.experimental import pallas as pl
from jax.experimental.pallas import tpu as pltpu


def se_kernel(x_ref, w1t_ref, b1_ref, w2t_ref, b2_ref, o_ref, *, inv_hw):
    # x_ref block: (Nb, C, HWp).  Squeeze: mean over the spatial (lane) axis.
    # Accumulate in f32 without binding a whole-tile f32 copy.
    pooled = jnp.sum(x_ref[...], axis=2, dtype=jnp.float32) * inv_hw   # (Nb, C)

    # Excitation, batched over the whole chunk:
    #   h = relu(pooled @ w1^T + b1)   -> (Nb, Cr)
    #   s = sigmoid(h @ w2^T + b2)     -> (Nb, C)
    h = jnp.dot(pooled, w1t_ref[...],
                preferred_element_type=jnp.float32) + b1_ref[...]
    h = jnp.maximum(h, 0.0)
    s = jnp.dot(h, w2t_ref[...],
                preferred_element_type=jnp.float32) + b2_ref[...]
    s = jax.nn.sigmoid(s)

    # Scale: re-read x_ref (streaming; no named whole-tile value kept live)
    # and broadcast the per-(batch, channel) gate over the spatial axis.
    o_ref[...] = (x_ref[...] * s[:, :, None].astype(o_ref.dtype)).astype(o_ref.dtype)


def _pick_block_n(n, row_bytes, target_block_bytes=8 << 20):
    """Rows per grid step: ~8 MiB blocks, >=2 steps for megacore when cheap."""
    nb = max(1, target_block_bytes // max(1, row_bytes))
    nb = int(min(nb, n))
    # Prefer at least 2 grid steps (v7x has 2 TensorCores) as long as each
    # block stays >= ~2 MiB; below that, per-step overhead dominates instead.
    if nb == n and n > 1 and pl.cdiv(n, 2) * row_bytes >= (2 << 20):
        nb = int(pl.cdiv(n, 2))
    return nb


def se_layer(x, w1, b1, w2, b2, block_n=None, donate_x=False):
    """x: (N, C, H, W). w1: (Cr, C), b1: (Cr,), w2: (C, Cr), b2: (C,)."""
    N, C, H, W = x.shape
    HW = H * W
    Cr = w1.shape[0]
    itemsize = jnp.dtype(x.dtype).itemsize

    # Lane-density guard: keep the last (lane) dim a multiple of 128 so the
    # writeback uses unmasked full-width stores.  Padded columns are zero and
    # sliced off; the pooling divisor stays the true HW so the mean is exact.
    HWp = int(pl.cdiv(HW, 128) * 128) if HW % 128 != 0 else HW

    x_flat = x.reshape(N, C, HW)
    if HWp != HW:
        x_flat = jnp.pad(x_flat, ((0, 0), (0, 0), (0, HWp - HW)))

    row_bytes = C * HWp * itemsize
    if block_n is None:
        nb = _pick_block_n(N, row_bytes)
    else:
        nb = max(1, min(int(block_n), N))

    # Explicit scoped-VMEM budget: double-buffered in+out blocks plus slack.
    # Floor at 32 MiB; cap at 48 MiB so it stays inside v7x's 64 MiB physical.
    vmem_limit_bytes = int(min(max(4 * nb * row_bytes + (2 << 20), 32 << 20),
                               48 << 20))

    # Pre-transpose weights so the kernel does row-major batched matmuls;
    # biases become (1, Cr)/(1, C) broadcast rows (no lane-width-1 tiles).
    w1t = w1.T                       # (C, Cr)
    w2t = w2.T                       # (Cr, C)
    b1r = b1.reshape(1, Cr)
    b2r = b2.reshape(1, C)

    kernel = functools.partial(se_kernel, inv_hw=1.0 / HW)

    cost = pl.CostEstimate(
        flops=int(2 * N * C * HW + 4 * N * C * Cr),
        transcendentals=int(N * C),
        bytes_accessed=int(2 * N * C * HWp * itemsize
                           + (2 * C * Cr + C + Cr) * itemsize),
    )

    out_flat = pl.pallas_call(
        kernel,
        out_shape=jax.ShapeDtypeStruct((N, C, HWp), x.dtype),
        grid_spec=pltpu.PrefetchScalarGridSpec(
            num_scalar_prefetch=0,
            grid=(pl.cdiv(N, nb),),
            in_specs=[
                pl.BlockSpec((nb, C, HWp), lambda i: (i, 0, 0)),
                pl.BlockSpec((C, Cr), lambda i: (0, 0)),
                pl.BlockSpec((1, Cr), lambda i: (0, 0)),
                pl.BlockSpec((Cr, C), lambda i: (0, 0)),
                pl.BlockSpec((1, C), lambda i: (0, 0)),
            ],
            out_specs=pl.BlockSpec((nb, C, HWp), lambda i: (i, 0, 0)),
        ),
        compiler_params=pltpu.CompilerParams(
            dimension_semantics=("parallel",),
            vmem_limit_bytes=vmem_limit_bytes,
        ),
        cost_estimate=cost,
        input_output_aliases=({0: 0} if donate_x else {}),
    )(x_flat, w1t, b1r, w2t, b2r)

    if HWp != HW:
        out_flat = out_flat[:, :, :HW]
    return out_flat.reshape(N, C, H, W)


def se_layer_ref(x, w1, b1, w2, b2):
    # Pure-JAX reference matching the PyTorch forward.
    n, c, _, _ = x.shape
    p = jnp.mean(x, axis=(2, 3))                 # (N, C)
    h = jnp.maximum(p @ w1.T + b1, 0.0)          # (N, Cr)
    s = jax.nn.sigmoid(h @ w2.T + b2)            # (N, C)
    return x * s.reshape(n, c, 1, 1)


if __name__ == "__main__":
    N, C, H, W = 4, 32, 16, 16
    reduction = 16
    Cr = C // reduction

    key = jax.random.PRNGKey(0)
    kx, k1, k2, k3, k4 = jax.random.split(key, 5)

    x = jax.random.normal(kx, (N, C, H, W), dtype=jnp.float32)
    # nn.Linear shapes: weight (out, in), bias (out,)
    w1 = jax.random.normal(k1, (Cr, C), dtype=jnp.float32) * 0.1
    b1 = jax.random.normal(k2, (Cr,), dtype=jnp.float32) * 0.1
    w2 = jax.random.normal(k3, (C, Cr), dtype=jnp.float32) * 0.1
    b2 = jax.random.normal(k4, (C,), dtype=jnp.float32) * 0.1

    ref = se_layer_ref(x, w1, b1, w2, b2)

    # Default (auto block size) path.
    out = jax.block_until_ready(se_layer(x, w1, b1, w2, b2))
    assert out.shape == (N, C, H, W)
    assert jnp.allclose(out, ref, atol=1e-5, rtol=1e-5), "mismatch (auto block)"

    # Ragged last block, NO wrapper pad: N=4, block_n=3 -> grid=2, partial tail.
    out2 = jax.block_until_ready(se_layer(x, w1, b1, w2, b2, block_n=3))
    assert jnp.allclose(out2, ref, atol=1e-5, rtol=1e-5), "mismatch (ragged block)"

    # Non-128-multiple spatial extent -> lane-pad guard path (HW=36 -> 128).
    x3 = jax.random.normal(kx, (3, C, 6, 6), dtype=jnp.float32)
    ref3 = se_layer_ref(x3, w1, b1, w2, b2)
    out3 = jax.block_until_ready(se_layer(x3, w1, b1, w2, b2))
    assert jnp.allclose(out3, ref3, atol=1e-5, rtol=1e-5), "mismatch (lane pad)"

    print("KERNEL_OK")
</pallas_src>

<mosaic_0001>
module attributes {stable_mosaic.version = 11 : i64} {
  func.func @se_kernel(%arg0: i32, %arg1: memref<4x32x256xf32, #tpu.memory_space<vmem>>, %arg2: memref<32x2xf32, #tpu.memory_space<vmem>>, %arg3: memref<1x2xf32, #tpu.memory_space<vmem>>, %arg4: memref<2x32xf32, #tpu.memory_space<vmem>>, %arg5: memref<1x32xf32, #tpu.memory_space<vmem>>, %arg6: memref<4x32x256xf32, #tpu.memory_space<vmem>>) attributes {dimension_semantics = [#tpu.dimension_semantics<parallel>], iteration_bounds = array<i64: 1>, scalar_prefetch = 0 : i64, scratch_operands = 0 : i64, tpu.core_type = #tpu.core_type<tc>, window_params = [{transform_indices = @transform_0, window_bounds = array<i64: 4, 32, 256>}, {pipeline_mode = #tpu.pipeline_mode<synchronous>, transform_indices = @transform_1, window_bounds = array<i64: 32, 2>}, {pipeline_mode = #tpu.pipeline_mode<synchronous>, transform_indices = @transform_2, window_bounds = array<i64: 1, 2>}, {pipeline_mode = #tpu.pipeline_mode<synchronous>, transform_indices = @transform_3, window_bounds = array<i64: 2, 32>}, {pipeline_mode = #tpu.pipeline_mode<synchronous>, transform_indices = @transform_4, window_bounds = array<i64: 1, 32>}, {transform_indices = @transform_5, window_bounds = array<i64: 4, 32, 256>}]} {
    %c0 = arith.constant 0 : index
    %c0_0 = arith.constant 0 : index
    %c0_1 = arith.constant 0 : index
    %0 = vector.load %arg1[%c0, %c0_0, %c0_1] : memref<4x32x256xf32, #tpu.memory_space<vmem>>, vector<4x32x256xf32>
    %cst = arith.constant dense<0.000000e+00> : vector<4x32xf32>
    %1 = vector.multi_reduction <add>, %0, %cst [2] : vector<4x32x256xf32> to vector<4x32xf32>
    %cst_2 = arith.constant 3.906250e-03 : f32
    %2 = vector.broadcast %cst_2 : f32 to vector<4x32xf32>
    %3 = arith.mulf %1, %2 : vector<4x32xf32>
    %c0_3 = arith.constant 0 : index
    %c0_4 = arith.constant 0 : index
    %4 = vector.load %arg2[%c0_3, %c0_4] : memref<32x2xf32, #tpu.memory_space<vmem>>, vector<32x2xf32>
    %cst_5 = arith.constant dense<0.000000e+00> : vector<4x2xf32>
    %5 = tpu.matmul %3, %4, %cst_5 {dimension_numbers = #tpu.dot_dimension_numbers<[1], [0], [0], [1], [0, 0, 1, 1], [], []>} : vector<4x32xf32>, vector<32x2xf32>, vector<4x2xf32> -> vector<4x2xf32>
    %c0_6 = arith.constant 0 : index
    %c0_7 = arith.constant 0 : index
    %6 = vector.load %arg3[%c0_6, %c0_7] : memref<1x2xf32, #tpu.memory_space<vmem>>, vector<1x2xf32>
    %7 = vector.broadcast %6 : vector<1x2xf32> to vector<4x2xf32>
    %8 = arith.addf %5, %7 : vector<4x2xf32>
    %cst_8 = arith.constant 0.000000e+00 : f32
    %9 = vector.broadcast %cst_8 : f32 to vector<4x2xf32>
    %10 = arith.maximumf %8, %9 : vector<4x2xf32>
    %c0_9 = arith.constant 0 : index
    %c0_10 = arith.constant 0 : index
    %11 = vector.load %arg4[%c0_9, %c0_10] : memref<2x32xf32, #tpu.memory_space<vmem>>, vector<2x32xf32>
    %cst_11 = arith.constant dense<0.000000e+00> : vector<4x32xf32>
    %12 = tpu.matmul %10, %11, %cst_11 {dimension_numbers = #tpu.dot_dimension_numbers<[1], [0], [0], [1], [0, 0, 1, 1], [], []>} : vector<4x2xf32>, vector<2x32xf32>, vector<4x32xf32> -> vector<4x32xf32>
    %c0_12 = arith.constant 0 : index
    %c0_13 = arith.constant 0 : index
    %13 = vector.load %arg5[%c0_12, %c0_13] : memref<1x32xf32, #tpu.memory_space<vmem>>, vector<1x32xf32>
    %14 = vector.broadcast %13 : vector<1x32xf32> to vector<4x32xf32>
    %15 = arith.addf %12, %14 : vector<4x32xf32>
    %16 = arith.negf %15 : vector<4x32xf32>
    %17 = math.exp %16 : vector<4x32xf32>
    %cst_14 = arith.constant 1.000000e+00 : f32
    %18 = vector.broadcast %cst_14 : f32 to vector<4x32xf32>
    %19 = arith.addf %18, %17 : vector<4x32xf32>
    %20 = arith.divf %18, %19 : vector<4x32xf32>
    %c0_15 = arith.constant 0 : index
    %c0_16 = arith.constant 0 : index
    %c0_17 = arith.constant 0 : index
    %21 = vector.load %arg1[%c0_15, %c0_16, %c0_17] : memref<4x32x256xf32, #tpu.memory_space<vmem>>, vector<4x32x256xf32>
    %22 = vector.shape_cast %20 : vector<4x32xf32> to vector<4x32x1xf32>
    %23 = vector.broadcast %22 : vector<4x32x1xf32> to vector<4x32x256xf32>
    %24 = arith.mulf %21, %23 : vector<4x32x256xf32>
    %c0_18 = arith.constant 0 : index
    %c0_19 = arith.constant 0 : index
    %c0_20 = arith.constant 0 : index
    %25 = vector.load %arg6[%c0_18, %c0_19, %c0_20] : memref<4x32x256xf32, #tpu.memory_space<vmem>>, vector<4x32x256xf32>
    tpu.vector_store %arg6[%c0_18, %c0_19, %c0_20], %24 {strides = array<i32>} : memref<4x32x256xf32, #tpu.memory_space<vmem>>, vector<4x32x256xf32>,
    return
  }
  func.func @transform_0(%arg0: i32) -> (i32, i32, i32) {
    %c0_i32 = arith.constant 0 : i32
    %c0_i32_0 = arith.constant 0 : i32
    %c0_i32_1 = arith.constant 0 : i32
    return %arg0, %c0_i32, %c0_i32_0 : i32, i32, i32
  }
  func.func @transform_1(%arg0: i32) -> (i32, i32) {
    %c0_i32 = arith.constant 0 : i32
    %c0_i32_0 = arith.constant 0 : i32
    %c0_i32_1 = arith.constant 0 : i32
    return %c0_i32, %c0_i32_0 : i32, i32
  }
  func.func @transform_2(%arg0: i32) -> (i32, i32) {
    %c0_i32 = arith.constant 0 : i32
    %c0_i32_0 = arith.constant 0 : i32
    %c0_i32_1 = arith.constant 0 : i32
    return %c0_i32, %c0_i32_0 : i32, i32
  }
  func.func @transform_3(%arg0: i32) -> (i32, i32) {
    %c0_i32 = arith.constant 0 : i32
    %c0_i32_0 = arith.constant 0 : i32
    %c0_i32_1 = arith.constant 0 : i32
    return %c0_i32, %c0_i32_0 : i32, i32
  }
  func.func @transform_4(%arg0: i32) -> (i32, i32) {
    %c0_i32 = arith.constant 0 : i32
    %c0_i32_0 = arith.constant 0 : i32
    %c0_i32_1 = arith.constant 0 : i32
    return %c0_i32, %c0_i32_0 : i32, i32
  }
  func.func @transform_5(%arg0: i32) -> (i32, i32, i32) {
    %c0_i32 = arith.constant 0 : i32
    %c0_i32_0 = arith.constant 0 : i32
    %c0_i32_1 = arith.constant 0 : i32
    return %arg0, %c0_i32, %c0_i32_0 : i32, i32, i32
  }
}

</mosaic_0001>

<bundles_post_ra>
// kernel: tpu_custom_call.1
= control target key start
LH: loop header
LB: loop body
LE: loop exit
PB: predicated region body
PF: predicated region fallthrough
CT: control target
= control target key end

     0   :  { %10 = vsyncpa [#allocation3], 0  ;;  %s874_s0 = inlined_call_operand.hbm [shape: f32[4,32,256], index: 0, kind: input, shape index: {}]   ;;  %s875_s1 = inlined_call_operand.vmem [shape: f32[32,2], index: 1, kind: input, shape index: {}]   ;;  %s876_s2 = inlined_call_operand.vmem [shape: f32[1,2], index: 2, kind: input, shape index: {}]   ;;  %s877_s3 = inlined_call_operand.vmem [shape: f32[2,32], index: 3, kind: input, shape index: {}]   ;;  %s878_s4 = inlined_call_operand.vmem [shape: f32[1,32], index: 4, kind: input, shape index: {}]   ;;  %s879_s5 = inlined_call_operand.hbm [shape: f32[4,32,256], index: 5, kind: output, shape index: {}]  }
   0x1   :  { %11 = vsyncpa [#allocation4], 0  ;;  %s654_s18 = smov [#allocation2]  }
   0x2   :  { %s17_s19 = sshll.u32 %s654_s18, 4  ;;  %s18_s19 = int_to_ptr.vmem [resolvable:$true] %s17_s19 }
   0x3   :  { %s618_s20 = scalar_lea.vmem %s18_s19, 4096  ;;  %p623_p1 = scmp.lt.s32.totalorder %s18_s19, %s18_s19 }
   0x4   :  { %p619_p0 = scmp.ne.s32.totalorder %s18_s19, %s618_s20  ;;  %p624_p2 = scmp.lt.s32.totalorder %s618_s20, %s618_s20 }
   0x6   :  { %p625_p3 = por %p624_p2, %p623_p1 }
   0x8   :  { %p626_p4 = pnand %p625_p3, %p619_p0 }
   0xa   :  { %629 = shalt.err (!%p626_p4)
}
   0xb   :  { %s655_s21 = smov 256   ;;  %s656_s22 = smov 16  }
   0xc   :  { %23 = dma.hbm_to_vmem [thread:$0]  %s874_s0, 4096, %s18_s19, [#allocation3], %s655_s21, %s655_s21, %s656_s22  }
   0xd   :  { %650 = dma.done.wait [#allocation3], 4096  }
   0xe   :  { %651 = vsyncadd [#allocation3], 4294963200  ;;  %v696_v0 = vld [vmem:[#allocation2 + $0x40] sm:$0xff]  ;;  %v698_v1 = vld [vmem:[#allocation2 + $0x48] sm:$0xff]  ;;  %v657_v48 = vmov 0.0   ;;  %vm658_vm0 = vmmov 0   ;;  %v158_v59 = vlaneseq }
   0xf   :  { %v700_v2 = vld [vmem:[#allocation2] sm:$0xff]  ;;  %v79_v3 = vadd.f32 %v698_v1, %v696_v0  ;;  %v704_v4 = vld [vmem:[#allocation2 + $0x8] sm:$0xff]  ;;  %v706_v5 = vld [vmem:[#allocation2 + $0x50] sm:$0xff]  ;;  %584 = vmatprep.subr.mxu0 %v657_v48  ;;  %595 = vmatprep.subr.mxu1 %v657_v48  ;;  %vm169_vm1 = vcmask 130112   ;;  %vm176_vm2 = vcmask 195712   ;;  %vm183_vm3 = vcmask 261312  }
  0x10   :  { %v708_v6 = vld [vmem:[#allocation2 + $0x58] sm:$0xff]  ;;  %v67_v7 = vadd.f32 %v704_v4, %v700_v2  ;;  %v712_v8 = vld [vmem:[#allocation2 + $0x10] sm:$0xff]  ;;  %v720_v12 = vld [vmem:[#allocation2 + $0x60] sm:$0xff]  ;;  %592 = vmatprep.mubr.msk.f32.mxu0 %vm658_vm0, %v657_v48  ;;  %597 = vmatprep.mubr.msk.f32.mxu1 %vm658_vm0, %v657_v48  ;;  %v159_v62 = vand.u32 127, %v158_v59  ;;  %v804_v63 = vshrl.u32 %v158_v59, 7  ;;  %vm242_vm4 = vcmask 1041409  }
  0x11   :  { %v714_v9 = vld [vmem:[#allocation2 + $0x18] sm:$0xff]  ;;  %80 = vadd.xlane.f32.xlu1 %v79_v3  ;;  %v82_v10 = vadd.f32 %v708_v6, %v706_v5  ;;  %v722_v13 = vld [vmem:[#allocation2 + $0x68] sm:$0xff]  ;;  %v724_v14 = vld [vmem:[#allocation2 + $0x20] sm:$0xff]  ;;  %vm244_vm5 = vcmask 1042434   ;;  %vm246_vm6 = vcmask 1043459   ;;  %vm248_vm7 = vcmask 261120  }
  0x12   :  { %68 = vadd.xlane.f32.xlu0 %v67_v7  ;;  %v70_v11 = vadd.f32 %v714_v9, %v712_v8  ;;  %v726_v15 = vld [vmem:[#allocation2 + $0x28] sm:$0xff]  ;;  %v85_v16 = vadd.f32 %v722_v13, %v720_v12  ;;  %v732_v18 = vld [vmem:[#allocation2 + $0x90] sm:$0xff]  ;;  %v734_v19 = vld [vmem:[#allocation2 + $0x98] sm:$0xff]  ;;  %v164_v3 = vadd.s32 4294967288, %v159_v62  ;;  %vm334_vm8 = vcmask 1041408  }
  0x13   :  { %v73_v17 = vadd.f32 %v726_v15, %v724_v14  ;;  %v736_v20 = vld [vmem:[#allocation2 + $0x80] sm:$0xff]  ;;  %v738_v21 = vld [vmem:[#allocation2 + $0x88] sm:$0xff]  ;;  %v94_v22 = vadd.f32 %v734_v19, %v732_v18  ;;  %v744_v24 = vld [vmem:[#allocation2 + $0x70] sm:$0xff]  ;;  %vm330_vm9 = vcmask 15360  }
  0x14   :  { %v91_v23 = vadd.f32 %v738_v21, %v736_v20  ;;  %v746_v25 = vld [vmem:[#allocation2 + $0x78] sm:$0xff]  ;;  %v748_v26 = vld [vmem:[#allocation2 + $0x30] sm:$0xff]  ;;  %v756_v30 = vld [vmem:[#allocation2 + $0xc0] sm:$0xff] }
  0x15   :  { %83 = vadd.xlane.f32.xlu1 %v82_v10  ;;  %v750_v27 = vld [vmem:[#allocation2 + $0x38] sm:$0xff]  ;;  %v88_v28 = vadd.f32 %v746_v25, %v744_v24  ;;  %v758_v31 = vld [vmem:[#allocation2 + $0xc8] sm:$0xff]  ;;  %v760_v32 = vld [vmem:[#allocation2 + $0xa0] sm:$0xff]  ;;  %v171_v10 = vadd.s32 4294967280, %v159_v62 }
  0x16   :  { %71 = vadd.xlane.f32.xlu0 %v70_v11  ;;  %v76_v29 = vadd.f32 %v750_v27, %v748_v26  ;;  %v762_v33 = vld [vmem:[#allocation2 + $0xa8] sm:$0xff]  ;;  %v103_v34 = vadd.f32 %v758_v31, %v756_v30  ;;  %v768_v36 = vld [vmem:[#allocation2 + $0xb0] sm:$0xff]  ;;  %v770_v37 = vld [vmem:[#allocation2 + $0xb8] sm:$0xff] }
  0x17   :  { %v97_v35 = vadd.f32 %v762_v33, %v760_v32  ;;  %v772_v38 = vld [vmem:[#allocation2 + $0xd0] sm:$0xff]  ;;  %v774_v39 = vld [vmem:[#allocation2 + $0xd8] sm:$0xff]  ;;  %v100_v40 = vadd.f32 %v770_v37, %v768_v36  ;;  %v784_v44 = vld [vmem:[#allocation2 + $0xe0] sm:$0xff] }
  0x18   :  { %883 = vst [vmem:[#allocation8_spill] sm:$0xff] %v774_v39  ;;  %v106_v41 = vadd.f32 %v774_v39, %v772_v38  ;;  %v780_v42 = vld [vmem:[#allocation2 + $0xf0] sm:$0xff]  ;;  %v782_v43 = vld [vmem:[#allocation2 + $0xf8] sm:$0xff]  ;;  %v786_v45 = vld [vmem:[#allocation2 + $0xe8] sm:$0xff] }
  0x19   :  { %86 = vadd.xlane.f32.xlu1 %v85_v16  ;;  %884 = vst [vmem:[#allocation9_spill] sm:$0xff] %v780_v42  ;;  %885 = vst [vmem:[#allocation10_spill] sm:$0xff] %v782_v43  ;;  %v112_v46 = vadd.f32 %v782_v43, %v780_v42  ;;  %v109_v47 = vadd.f32 %v786_v45, %v784_v44  ;;  %v134_v49 = vld [vmem:[%s875_s1 + $0x18] sm:$0xff]  ;;  %v133_v50 = vld [vmem:[%s875_s1 + $0x10] sm:$0xff]  ;;  %v178_v16 = vadd.s32 4294967272, %v159_v62 }
  0x1a   :  { %74 = vadd.xlane.f32.xlu0 %v73_v17  ;;  %585 = vmatpush3.msra.mxu0 %v134_v49  ;;  %v132_v51 = vld [vmem:[%s875_s1 + $0x8] sm:$0xff]  ;;  %v131_v52 = vld [vmem:[%s875_s1] sm:$0xff]  ;;  %v162_v17 = vsub.s32 %v159_v62, %v804_v63 }
  0x1b   :  { %586 = vmatprep.subr.mxu0 %v657_v48  ;;  %v181_v49 = vsub.s32 %v178_v16, %v804_v63 }
  0x1c   :  { %587 = vmatpush3.msra.mxu0 %v133_v50 }
  0x1d   :  { %95 = vadd.xlane.f32.xlu1 %v94_v22  ;;  %588 = vmatprep.subr.mxu0 %v657_v48 }
  0x1e   :  { %92 = vadd.xlane.f32.xlu0 %v91_v23  ;;  %589 = vmatpush3.msra.mxu0 %v132_v51  ;;  %v167_v23 = vsub.s32 %v164_v3, %v804_v63 }
  0x1f   :  { %590 = vmatprep.subr.mxu0 %v657_v48 }
  0x20   :  { %591 = vmatpush3.msra.mxu0 %v131_v52 }
  0x21   :  { %89 = vadd.xlane.f32.xlu1 %v88_v28 }
  0x22   :  { %77 = vadd.xlane.f32.xlu0 %v76_v29 }
  0x25   :  { %104 = vadd.xlane.f32.xlu1 %v103_v34 }
  0x26   :  { %98 = vadd.xlane.f32.xlu0 %v97_v35  ;;  %v174_v35 = vsub.s32 %v171_v10, %v804_v63 }
  0x29   :  { %101 = vadd.xlane.f32.xlu1 %v100_v40 }
  0x2a   :  { %107 = vadd.xlane.f32.xlu0 %v106_v41 }
  0x2d   :  { %113 = vadd.xlane.f32.xlu1 %v112_v46 }
  0x2e   :  { %110 = vadd.xlane.f32.xlu0 %v109_v47 }
  0x9a   :  { %v81_v53 = vpop.xlane.xlu1 %80 }
  0x9b   :  { %v69_v54 = vpop.xlane.xlu0 %68  ;;  %v119_v22 = vmul.f32 0.00390625, %v81_v53 }
  0x9c   :  { %v115_v51 = vmul.f32 0.00390625, %v69_v54 }
  0x9d   :  { %v188_v53 = vrot.slane %v119_v22, %v162_v17 }
  0x9e   :  { %v84_v55 = vpop.xlane.xlu1 %83  ;;  %v163_v16 = vrot.slane %v115_v51, %v162_v17 }
  0x9f   :  { %v72_v56 = vpop.xlane.xlu0 %71  ;;  %v120_v28 = vmul.f32 0.00390625, %v84_v55 }
  0xa0   :  { %v116_v34 = vmul.f32 0.00390625, %v72_v56 }
  0xa1   :  { %v192_v62 = vrot.slane %v120_v28, %v167_v23 }
  0xa2   :  { %v87_v57 = vpop.xlane.xlu1 %86  ;;  %v168_v56 = vrot.slane %v116_v34, %v167_v23 }
  0xa3   :  { %v75_v58 = vpop.xlane.xlu0 %74  ;;  %v121_v40 = vmul.f32 0.00390625, %v87_v57 }
  0xa4   :  { %v117_v41 = vmul.f32 0.00390625, %v75_v58 }
  0xa5   :  { %v197_v3 = vrot.slane %v121_v40, %v174_v35 }
  0xa6   :  { %v96_v60 = vpop.xlane.xlu1 %95  ;;  %v175_v10 = vrot.slane %v117_v41, %v174_v35 }
  0xa7   :  { %v93_v61 = vpop.xlane.xlu0 %92  ;;  %v124_v47 = vmul.f32 0.00390625, %v96_v60 }
  0xa8   :  { %v123_v48 = vmul.f32 0.00390625, %v93_v61 }
  0xa9   :  { %v211_v43 = vrot.slane %v124_v47, %v167_v23 }
  0xaa   :  { %v90_v7 = vpop.xlane.xlu1 %89  ;;  %v207_v60 = vrot.slane %v123_v48, %v162_v17 }
  0xab   :  { %v78_v11 = vpop.xlane.xlu0 %77  ;;  %v122_v50 = vmul.f32 0.00390625, %v90_v7 }
  0xac   :  { %v118_v52 = vmul.f32 0.00390625, %v78_v11  ;;  %v193_v11 = vsel %vm169_vm1, %v192_v62, %v188_v53  ;;  %v212_v48 = vsel %vm169_vm1, %v211_v43, %v207_v60 }
  0xad   :  { %v202_v61 = vrot.slane %v122_v50, %v181_v49  ;;  %v198_v34 = vsel %vm176_vm2, %v197_v3, %v193_v11 }
  0xae   :  { %v105_v29 = vpop.xlane.xlu1 %104  ;;  %v182_v7 = vrot.slane %v118_v52, %v181_v49 }
  0xaf   :  { %v99_v46 = vpop.xlane.xlu0 %98  ;;  %v127_v54 = vmul.f32 0.00390625, %v105_v29  ;;  %v203_v50 = vsel %vm183_vm3, %v202_v61, %v198_v34  ;;  %v573_v61 = vld [vmem:[%s878_s4] ss:$0 sm:$0xff] }
  0xb0   :  { %v125_v59 = vmul.f32 0.00390625, %v99_v46  ;;  %v170_v46 = vsel %vm169_vm1, %v168_v56, %v163_v16 }
  0xb1   :  { %v177_v47 = vsel %vm176_vm2, %v175_v10, %v170_v46  ;;  %v226_v52 = vrot.slane %v127_v54, %v162_v17  ;;  %v571_v17 = vld [vmem:[%s876_s2] ss:$0 sm:$0xff]  ;;  %v416_v46 = vsub.s32 0, %v804_v63  ;;  %s659_s2 = smov [#allocation5]  }
  0xb2   :  { %v102_v55 = vpop.xlane.xlu1 %101  ;;  %v216_v39 = vrot.slane %v125_v59, %v174_v35  ;;  %v184_v51 = vsel %vm183_vm3, %v182_v7, %v177_v47  ;;  %v454_v47 = vsub.s32 2, %v804_v63 }
  0xb3   :  { %v126_v57 = vmul.f32 0.00390625, %v102_v55  ;;  %v108_v58 = vpop.xlane.xlu0 %107  ;;  %v243_v43 = vsel %vm242_vm4, %v203_v50, %v184_v51  ;;  %v473_v50 = vsub.s32 3, %v804_v63 }
  0xb4   :  { %v128_v42 = vmul.f32 0.00390625, %v108_v58  ;;  %v217_v59 = vsel %vm176_vm2, %v216_v39, %v212_v48  ;;  %v322_v39 = vld [vmem:[%s877_s3] sm:$0x3]  ;;  %s559_s3 = sshll.u32 %s659_s2, 4  ;;  %s560_s3 = int_to_ptr.vmem [resolvable:$true] %s559_s3 }
  0xb5   :  { %v221_v22 = vrot.slane %v126_v57, %v181_v49  ;;  %596 = vmatpush3.msk.msra.mxu1 %vm334_vm8, %v322_v39  ;;  %s630_s4 = scalar_lea.vmem %s560_s3, 4096  ;;  %p635_p6 = scmp.lt.s32.totalorder %s560_s3, %s560_s3 }
  0xb6   :  { %v114_v28 = vpop.xlane.xlu1 %113  ;;  %v230_v40 = vrot.slane %v128_v42, %v167_v23  ;;  %p631_p5 = scmp.ne.s32.totalorder %s560_s3, %s630_s4  ;;  %p636_p7 = scmp.lt.s32.totalorder %s630_s4, %s630_s4 }
  0xb7   :  { %v111_v41 = vpop.xlane.xlu0 %110  ;;  %v130_v55 = vmul.f32 0.00390625, %v114_v28  ;;  %v222_v62 = vsel %vm183_vm3, %v221_v22, %v217_v59 }
  0xb8   :  { %v129_v29 = vmul.f32 0.00390625, %v111_v41  ;;  %v231_v42 = vsel %vm169_vm1, %v230_v40, %v226_v52  ;;  %v245_v10 = vsel %vm244_vm5, %v222_v62, %v243_v43  ;;  %v435_v41 = vsub.s32 1, %v804_v63  ;;  %p637_p8 = por %p636_p7, %p635_p6 }
  0xb9   :  { %v240_v53 = vrot.slane %v130_v55, %v181_v49 }
  0xba   :  { %v235_v56 = vrot.slane %v129_v29, %v174_v35  ;;  %p638_p9 = pnand %p637_p8, %p631_p5 }
  0xbc   :  { %v236_v23 = vsel %vm176_vm2, %v235_v56, %v231_v42 }
  0xbd   :  { %v241_v3 = vsel %vm183_vm3, %v240_v53, %v236_v23 }
  0xbe   :  { %v247_v57 = vsel %vm246_vm6, %v241_v3, %v245_v10 }
  0xbf   :  { %593 = vmatmul.mubr.msk.f32.vlgmr.msra.gmra.mxu0 %vm248_vm7, %v247_v57 }
 0x17f   :  { %v317_v35 = vpop.f32.mrf.mxu0 }
 0x180   :  { %v318_v49 = vadd.f32 %v571_v17, %v317_v35 }
 0x181   :  { %v594_v58 = vpop.f32.mrf.mxu0 }
 0x182   :  { %v321_v60 = vmax.f32 %v318_v49, 0.0 }
 0x184   :  { %598 = vmatmul.mubr.msk.f32.vlgmr.msra.gmra.mxu1 %vm330_vm9, %v321_v60 }
 0x244   :  { %v404_v16 = vpop.f32.mrf.mxu1 }
 0x245   :  { %v405_v7 = vadd.f32 %v573_v61, %v404_v16 }
 0x246   :  { %v599_v54 = vpop.f32.mrf.mxu1 }
 0x247   :  { %v576_v11 = vmul.f32 -1.442695, %v405_v7  ;;  %v887_v54 = vld [vmem:[#allocation9_spill] sm:$0xff] }
 0x249   :  { %606 = vpow2.f32 %v576_v11  ;;  %v888_v11 = vld [vmem:[#allocation10_spill] sm:$0xff] }
 0x256   :  { %v607_v22 = vpop.eup %606 }
 0x257   :  { %v411_v28 = vadd.f32 1.0, %v607_v22 }
 0x259   :  { %608 = vrcp.f32 %v411_v28 }
 0x266   :  { %v609_v34 = vpop.eup %608 }
 0x267   :  { %v417_v40 = vrot.slane %v609_v34, %v416_v46  ;;  %v436_v55 = vrot.slane %v609_v34, %v435_v41  ;;  %v455_v48 = vrot.slane %v609_v34, %v454_v47  ;;  %v474_v29 = vrot.slane %v609_v34, %v473_v50 }
 0x269   :  { %423 = vbcast.lane.b32.xlu1 %v417_v40, 264  ;;  %419 = vbcast.lane.b32.xlu0 %v417_v40, 256 }
 0x26d   :  { %427 = vbcast.lane.b32.xlu1 %v417_v40, 272  ;;  %438 = vbcast.lane.b32.xlu0 %v436_v55, 256 }
 0x271   :  { %431 = vbcast.lane.b32.xlu1 %v417_v40, 280  ;;  %446 = vbcast.lane.b32.xlu0 %v436_v55, 272 }
 0x275   :  { %442 = vbcast.lane.b32.xlu1 %v436_v55, 264  ;;  %457 = vbcast.lane.b32.xlu0 %v455_v48, 256 }
 0x279   :  { %450 = vbcast.lane.b32.xlu1 %v436_v55, 280  ;;  %465 = vbcast.lane.b32.xlu0 %v455_v48, 272 }
 0x27d   :  { %461 = vbcast.lane.b32.xlu1 %v455_v48, 264  ;;  %476 = vbcast.lane.b32.xlu0 %v474_v29, 256 }
 0x281   :  { %469 = vbcast.lane.b32.xlu1 %v455_v48, 280  ;;  %484 = vbcast.lane.b32.xlu0 %v474_v29, 272 }
 0x285   :  { %480 = vbcast.lane.b32.xlu1 %v474_v29, 264 }
 0x289   :  { %488 = vbcast.lane.b32.xlu1 %v474_v29, 280 }
 0x2db   :  { %v424_v51 = vpop.permute.xlu1 %423  ;;  %v420_v52 = vpop.permute.xlu0 %419 }
 0x2dc   :  { %v492_v59 = vmul.f32 %v424_v51, %v712_v8  ;;  %v493_v53 = vmul.f32 %v424_v51, %v714_v9  ;;  %v490_v62 = vmul.f32 %v420_v52, %v700_v2  ;;  %v491_v56 = vmul.f32 %v420_v52, %v704_v4 }
 0x2de   :  { %524 = vst [vmem:[#allocation5 + $0x10] sm:$0xff] %v492_v59  ;;  %525 = vst [vmem:[#allocation5 + $0x18] sm:$0xff] %v493_v53 }
 0x2df   :  { %522 = vst [vmem:[#allocation5] sm:$0xff] %v490_v62  ;;  %523 = vst [vmem:[#allocation5 + $0x8] sm:$0xff] %v491_v56  ;;  %v428_v63 = vpop.permute.xlu1 %427  ;;  %v439_v42 = vpop.permute.xlu0 %438 }
 0x2e0   :  { %v494_v23 = vmul.f32 %v428_v63, %v724_v14  ;;  %v495_v43 = vmul.f32 %v428_v63, %v726_v15  ;;  %v498_v3 = vmul.f32 %v439_v42, %v696_v0  ;;  %v499_v8 = vmul.f32 %v439_v42, %v698_v1 }
 0x2e2   :  { %526 = vst [vmem:[#allocation5 + $0x20] sm:$0xff] %v494_v23  ;;  %527 = vst [vmem:[#allocation5 + $0x28] sm:$0xff] %v495_v43 }
 0x2e3   :  { %530 = vst [vmem:[#allocation5 + $0x40] sm:$0xff] %v498_v3  ;;  %531 = vst [vmem:[#allocation5 + $0x48] sm:$0xff] %v499_v8  ;;  %v432_v2 = vpop.permute.xlu1 %431  ;;  %v447_v4 = vpop.permute.xlu0 %446 }
 0x2e4   :  { %v496_v9 = vmul.f32 %v432_v2, %v748_v26  ;;  %v497_v10 = vmul.f32 %v432_v2, %v750_v27  ;;  %v502_v57 = vmul.f32 %v447_v4, %v720_v12  ;;  %v503_v14 = vmul.f32 %v447_v4, %v722_v13 }
 0x2e6   :  { %528 = vst [vmem:[#allocation5 + $0x30] sm:$0xff] %v496_v9  ;;  %529 = vst [vmem:[#allocation5 + $0x38] sm:$0xff] %v497_v10 }
 0x2e7   :  { %534 = vst [vmem:[#allocation5 + $0x60] sm:$0xff] %v502_v57  ;;  %535 = vst [vmem:[#allocation5 + $0x68] sm:$0xff] %v503_v14  ;;  %v443_v0 = vpop.permute.xlu1 %442  ;;  %v458_v1 = vpop.permute.xlu0 %457 }
 0x2e8   :  { %v500_v15 = vmul.f32 %v443_v0, %v706_v5  ;;  %v501_v39 = vmul.f32 %v443_v0, %v708_v6  ;;  %v506_v17 = vmul.f32 %v458_v1, %v736_v20  ;;  %v507_v26 = vmul.f32 %v458_v1, %v738_v21 }
 0x2ea   :  { %532 = vst [vmem:[#allocation5 + $0x50] sm:$0xff] %v500_v15  ;;  %533 = vst [vmem:[#allocation5 + $0x58] sm:$0xff] %v501_v39 }
 0x2eb   :  { %538 = vst [vmem:[#allocation5 + $0x80] sm:$0xff] %v506_v17  ;;  %539 = vst [vmem:[#allocation5 + $0x88] sm:$0xff] %v507_v26  ;;  %v451_v12 = vpop.permute.xlu1 %450  ;;  %v466_v13 = vpop.permute.xlu0 %465 }
 0x2ec   :  { %v504_v27 = vmul.f32 %v451_v12, %v744_v24  ;;  %v505_v35 = vmul.f32 %v451_v12, %v746_v25  ;;  %v510_v49 = vmul.f32 %v466_v13, %v760_v32  ;;  %v511_v5 = vmul.f32 %v466_v13, %v762_v33 }
 0x2ee   :  { %536 = vst [vmem:[#allocation5 + $0x70] sm:$0xff] %v504_v27  ;;  %537 = vst [vmem:[#allocation5 + $0x78] sm:$0xff] %v505_v35 }
 0x2ef   :  { %542 = vst [vmem:[#allocation5 + $0xa0] sm:$0xff] %v510_v49  ;;  %543 = vst [vmem:[#allocation5 + $0xa8] sm:$0xff] %v511_v5  ;;  %v462_v6 = vpop.permute.xlu1 %461  ;;  %v477_v20 = vpop.permute.xlu0 %476 }
 0x2f0   :  { %v508_v21 = vmul.f32 %v462_v6, %v732_v18  ;;  %v509_v58 = vmul.f32 %v462_v6, %v734_v19  ;;  %v514_v60 = vmul.f32 %v477_v20, %v756_v30  ;;  %v515_v24 = vmul.f32 %v477_v20, %v758_v31  ;;  %v886_v31 = vld [vmem:[#allocation8_spill] sm:$0xff] }
 0x2f2   :  { %540 = vst [vmem:[#allocation5 + $0x90] sm:$0xff] %v508_v21  ;;  %541 = vst [vmem:[#allocation5 + $0x98] sm:$0xff] %v509_v58 }
 0x2f3   :  { %546 = vst [vmem:[#allocation5 + $0xc0] sm:$0xff] %v514_v60  ;;  %547 = vst [vmem:[#allocation5 + $0xc8] sm:$0xff] %v515_v24  ;;  %v470_v25 = vpop.permute.xlu1 %469  ;;  %v485_v32 = vpop.permute.xlu0 %484 }
 0x2f4   :  { %v512_v33 = vmul.f32 %v470_v25, %v768_v36  ;;  %v513_v61 = vmul.f32 %v470_v25, %v770_v37  ;;  %v518_v16 = vmul.f32 %v485_v32, %v784_v44  ;;  %v519_v18 = vmul.f32 %v485_v32, %v786_v45 }
 0x2f6   :  { %544 = vst [vmem:[#allocation5 + $0xb0] sm:$0xff] %v512_v33  ;;  %545 = vst [vmem:[#allocation5 + $0xb8] sm:$0xff] %v513_v61 }
 0x2f7   :  { %550 = vst [vmem:[#allocation5 + $0xe0] sm:$0xff] %v518_v16  ;;  %551 = vst [vmem:[#allocation5 + $0xe8] sm:$0xff] %v519_v18  ;;  %v481_v19 = vpop.permute.xlu1 %480 }
 0x2f8   :  { %v516_v30 = vmul.f32 %v481_v19, %v772_v38  ;;  %v517_v7 = vmul.f32 %v481_v19, %v886_v31 }
 0x2fa   :  { %548 = vst [vmem:[#allocation5 + $0xd0] sm:$0xff] %v516_v30  ;;  %549 = vst [vmem:[#allocation5 + $0xd8] sm:$0xff] %v517_v7 }
 0x2fb   :  { %v489_v36 = vpop.permute.xlu1 %488 }
 0x2fc   :  { %v520_v37 = vmul.f32 %v489_v36, %v887_v54  ;;  %v521_v44 = vmul.f32 %v489_v36, %v888_v11 }
 0x2fe   :  { %552 = vst [vmem:[#allocation5 + $0xf0] sm:$0xff] %v520_v37  ;;  %553 = vst [vmem:[#allocation5 + $0xf8] sm:$0xff] %v521_v44 }
 0x2ff   :  { %641 = shalt.err (!%p638_p9)
}
 0x300   :  { %565 = dma.vmem_to_hbm [thread:$0]  %s560_s3, 4096, %s879_s5, [#allocation4], %s655_s21, %s655_s21, %s656_s22  }
 0x301   :  { %652 = dma.done.wait [#allocation4], 4096  }
 0x302   :  { %653 = vsyncadd [#allocation4], 4294963200 }
 0x303   :  { %569 = vsyncpa [#allocation3], 1 }
 0x304   :  { %570 = vsyncpa [#allocation4], 1 }

</bundles_post_ra>
